<compile_context>
chip_gen: v5e
topology: v5e:2x2
jax: 0.10.0
libtpu: 0.0.40
codegen_flags: <defaults>
</compile_context>

<pallas_src>
import jax
import jax.numpy as jnp
from jax.experimental import pallas as pl
from jax.experimental.pallas import tpu as pltpu


def _make_encoder_kernel(T, L, B, D, H, offs):
    """Build the kernel for static (T, L, B, D, H) and static packed-slab row offsets."""
    D2, H2 = 2 * D, 2 * H
    OFF_WIN, OFF_REC0 = offs[0], offs[1]
    OFF_IH = [offs[2 + 2 * (l - 1)] for l in range(1, L)]
    OFF_HH = [offs[3 + 2 * (l - 1)] for l in range(1, L)]

    def kernel(x_ref, w_ref, b_ref, head_ref, out_ref):
        # ---- hoist all parameter loads / bias broadcasts out of the recurrent loop ----
        w_in = w_ref[OFF_WIN:OFF_WIN + D2, :]                        # bf16 (2D, 2H)
        w_rec0 = w_ref[OFF_REC0:OFF_REC0 + H2, :]                    # bf16 (2H, 2H)
        w_ih = [w_ref[OFF_IH[l - 1]:OFF_IH[l - 1] + H2, :] for l in range(1, L)]
        w_hh = [w_ref[OFF_HH[l - 1]:OFF_HH[l - 1] + H2, :] for l in range(1, L)]

        b0 = b_ref[0:1, :]                                           # f32 (1, 2H)
        # hoist bias broadcasts (JAX does not CSE broadcast_in_dim inside the unrolled loop)
        b_l = [jnp.broadcast_to(b_ref[l:l + 1, :], (B, H2)) for l in range(1, L)]

        w_head = head_ref[0:H2, :]                                   # f32 (2H, OUT)
        b_head = head_ref[H2:H2 + 1, :]                              # f32 (1, OUT)

        # ---- layer-0 input projections, hoisted out of the recurrence ----
        # x_ref is bf16 (T*B, 2D) with [:, :D] = x[t] and [:, D:] = x[T-1-t] (reversal
        # folded in by the wrapper); one matmul gives [x[t]@Wih0_f | x[T-1-t]@Wih0_b] + b.
        proj = jnp.dot(x_ref[...], w_in, preferred_element_type=jnp.float32) + b0

        # hidden state: tuple of per-layer (B, 2H) f32 arrays, cols [:H]=fwd, [H:]=bwd

        # ---- t = 0 peeled: h == 0, so every recurrent (hh) contribution vanishes ----
        new_h = [jnp.tanh(proj[0:B, :])]
        for l in range(1, L):
            z = jnp.dot(new_h[l - 1].astype(jnp.bfloat16), w_ih[l - 1],
                        preferred_element_type=jnp.float32) + b_l[l - 1]
            new_h.append(jnp.tanh(z))
        h = tuple(new_h)

        # ---- fully unrolled remaining time steps (T static & tiny) ----
        for t in range(1, T):
            # layer 0: one block-diagonal recurrent matmul for both directions
            z0 = proj[t * B:(t + 1) * B, :] + jnp.dot(
                h[0].astype(jnp.bfloat16), w_rec0, preferred_element_type=jnp.float32)
            new_h = [jnp.tanh(z0)]
            # layers 1..L-1: split ih / hh dots — the hh dot depends only on the
            # previous step's h[l] so it can issue before the layer-(l-1) tanh finishes.
            for l in range(1, L):
                z = (jnp.dot(h[l].astype(jnp.bfloat16), w_hh[l - 1],
                             preferred_element_type=jnp.float32)
                     + jnp.dot(new_h[l - 1].astype(jnp.bfloat16), w_ih[l - 1],
                               preferred_element_type=jnp.float32)
                     + b_l[l - 1])
                new_h.append(jnp.tanh(z))
            h = tuple(new_h)

        # sequence embedding = [fwd last-layer h | bwd last-layer h] == h[L-1] layout.
        # Fused mu/logvar head in f32 (off the critical path), padded to 128 output
        # lanes so the final store is an unmasked full-width vst.
        out_ref[...] = (jnp.dot(h[L - 1], w_head, preferred_element_type=jnp.float32)
                        + b_head)

    return kernel


def _blockdiag(a, b):
    ra, ca = a.shape
    rb, cb = b.shape
    z_top = jnp.zeros((ra, cb), jnp.float32)
    z_bot = jnp.zeros((rb, ca), jnp.float32)
    return jnp.concatenate(
        [jnp.concatenate([a, z_top], axis=1),
         jnp.concatenate([z_bot, b], axis=1)], axis=0)


def _pack_rows(blocks, align=16):
    """Stack row-blocks so every block starts at a row offset aligned to `align`."""
    cols = blocks[0].shape[1]
    pieces, offs, rows = [], [], 0
    for blk in blocks:
        pad = (-rows) % align
        if pad:
            pieces.append(jnp.zeros((pad, cols), jnp.float32))
            rows += pad
        offs.append(rows)
        pieces.append(blk)
        rows += blk.shape[0]
    return jnp.concatenate(pieces, axis=0), offs


def pack_encoder_params(fwd_params, bwd_params, wm, bm, wv, bv):
    """One-time parameter packing (do NOT re-run per forward call).

    Returns ((w_pack_bf16, b_pack_f32, head_pack_f32), meta).
    """
    L = len(fwd_params) // 4
    D = fwd_params[0].shape[0]
    H = fwd_params[1].shape[0]
    H2 = 2 * H

    # bf16 weight slab: input proj, layer-0 recurrent, then per-layer (ih, hh) blockdiags.
    blocks = [
        _blockdiag(fwd_params[0], bwd_params[0]),               # (2D, 2H)
        _blockdiag(fwd_params[1], bwd_params[1]),               # (2H, 2H)
    ]
    for l in range(1, L):
        blocks.append(_blockdiag(fwd_params[4 * l], bwd_params[4 * l]))          # ih
        blocks.append(_blockdiag(fwd_params[4 * l + 1], bwd_params[4 * l + 1]))  # hh
    w_pack_f32, offs = _pack_rows(blocks, align=16)              # bf16 sublane tile = 16
    w_pack = w_pack_f32.astype(jnp.bfloat16)
    assert all(o % 16 == 0 for o in offs)

    # f32 bias slab: per-layer pre-summed (b_ih + b_hh), fwd|bwd concatenated.
    biases = [jnp.concatenate(
        [fwd_params[4 * l + 2] + fwd_params[4 * l + 3],
         bwd_params[4 * l + 2] + bwd_params[4 * l + 3]],
        axis=-1) for l in range(L)]
    b_pack = jnp.concatenate(biases, axis=0)                     # (L, 2H) f32

    # f32 head slab, output columns padded to a multiple of 128 lanes for unmasked store.
    out_cols = max(H2, 128)
    out_cols = ((out_cols + 127) // 128) * 128
    w_head = jnp.concatenate([wm, wv], axis=-1)                  # (2H, 2H)
    b_head = jnp.concatenate([bm, bv], axis=-1)                  # (1, 2H)
    pad = out_cols - H2
    if pad > 0:
        w_head = jnp.pad(w_head, ((0, 0), (0, pad)))
        b_head = jnp.pad(b_head, ((0, 0), (0, pad)))
    head_pack = jnp.concatenate([w_head, b_head], axis=0)        # (2H+1, out_cols) f32

    meta = dict(L=L, D=D, H=H, offs=tuple(offs), out_cols=out_cols)
    return (w_pack, b_pack, head_pack), meta


def encoder_forward(x, packed, meta):
    """x: (T, B, D) float32.  Returns (mu, logvar), each (B, H) float32."""
    w_pack, b_pack, head_pack = packed
    T, B, D = x.shape
    L, H = meta["L"], meta["H"]
    assert D == meta["D"]

    # fold the backward-direction time reversal into the packed input; cast to bf16 in
    # the wrapper so the kernel input DMA is half-width and needs no in-kernel cast.
    x2 = jnp.concatenate([x, x[::-1]], axis=-1).reshape(T * B, 2 * D).astype(jnp.bfloat16)

    kernel = _make_encoder_kernel(T, L, B, D, H, meta["offs"])
    vmem = pl.BlockSpec(memory_space=pltpu.MemorySpace.VMEM)

    out = pl.pallas_call(
        kernel,
        out_shape=jax.ShapeDtypeStruct((B, meta["out_cols"]), jnp.float32),
        in_specs=[vmem, vmem, vmem, vmem],
        out_specs=vmem,
    )(x2, w_pack, b_pack, head_pack)

    return out[:, :H], out[:, H:2 * H]


def encoder_reference(x, fwd_params, bwd_params, wm, bm, wv, bv):
    """Pure-JAX f32 reference for correctness checking."""
    T, B, D = x.shape
    L = len(fwd_params) // 4
    H = wm.shape[1]

    def step(params, xt, h):
        new_h, inp = [], xt
        for l in range(L):
            w_ih, w_hh, b_ih, b_hh = params[4 * l: 4 * l + 4]
            hl = jnp.tanh(inp @ w_ih + b_ih + h[l] @ w_hh + b_hh)
            new_h.append(hl)
            inp = hl
        return jnp.stack(new_h, axis=0)

    fh = jnp.zeros((L, B, H), jnp.float32)
    bh = jnp.zeros((L, B, H), jnp.float32)
    for t in range(T):
        fh = step(fwd_params, x[t], fh)
        bh = step(bwd_params, x[T - 1 - t], bh)
    emb = jnp.concatenate([fh[-1], bh[-1]], axis=-1)
    return emb @ wm + bm, emb @ wv + bv


def make_rnn_params(key, L, D, H, scale=0.1):
    """Deterministic per-layer [W_ih, W_hh, b_ih, b_hh] * L (weights as (in, out))."""
    params = []
    for l in range(L):
        key, k1, k2, k3, k4 = jax.random.split(key, 5)
        d_in = D if l == 0 else H
        params += [
            scale * jax.random.normal(k1, (d_in, H), jnp.float32),
            scale * jax.random.normal(k2, (H, H), jnp.float32),
            scale * jax.random.normal(k3, (1, H), jnp.float32),
            scale * jax.random.normal(k4, (1, H), jnp.float32),
        ]
    return params, key


if __name__ == "__main__":
    # Small shapes consistent with the module: seq=6, batch=8, input_dim=16,
    # hidden_dim=32, num_layers=2.
    T, B, D, H, L = 6, 8, 16, 32, 2

    key = jax.random.PRNGKey(0)
    key, kx = jax.random.split(key)
    x = jax.random.normal(kx, (T, B, D), jnp.float32)

    fwd_params, key = make_rnn_params(key, L, D, H)
    bwd_params, key = make_rnn_params(key, L, D, H)
    key, k1, k2, k3, k4 = jax.random.split(key, 5)
    wm = 0.1 * jax.random.normal(k1, (2 * H, H), jnp.float32)
    bm = 0.1 * jax.random.normal(k2, (1, H), jnp.float32)
    wv = 0.1 * jax.random.normal(k3, (2 * H, H), jnp.float32)
    bv = 0.1 * jax.random.normal(k4, (1, H), jnp.float32)

    # one-time parameter packing (outside the per-call path)
    packed, meta = pack_encoder_params(fwd_params, bwd_params, wm, bm, wv, bv)
    packed = jax.block_until_ready(packed)

    mu, logvar = encoder_forward(x, packed, meta)
    mu, logvar = jax.block_until_ready((mu, logvar))

    mu_ref, logvar_ref = encoder_reference(x, fwd_params, bwd_params, wm, bm, wv, bv)
    assert mu.shape == (B, H) and logvar.shape == (B, H)
    # bf16 MXU operands in the recurrence (f32 accumulation, f32 head) -> relaxed
    # tolerance vs the pure-f32 reference.
    assert jnp.allclose(mu, mu_ref, atol=3e-2, rtol=3e-2)
    assert jnp.allclose(logvar, logvar_ref, atol=3e-2, rtol=3e-2)

    print("KERNEL_OK")
</pallas_src>

<mosaic_0001>
module attributes {stable_mosaic.version = 11 : i64} {
  func.func @kernel(%arg0: memref<48x32xbf16, #tpu.memory_space<vmem>>, %arg1: memref<224x64xbf16, #tpu.memory_space<vmem>>, %arg2: memref<2x64xf32, #tpu.memory_space<vmem>>, %arg3: memref<65x128xf32, #tpu.memory_space<vmem>>, %arg4: memref<8x128xf32, #tpu.memory_space<vmem>>) attributes {dimension_semantics = [], scalar_prefetch = 0 : i64, scratch_operands = 0 : i64, tpu.core_type = #tpu.core_type<tc>} {
    %c0 = arith.constant 0 : index
    %c0_0 = arith.constant 0 : index
    %0 = vector.load %arg1[%c0, %c0_0] : memref<224x64xbf16, #tpu.memory_space<vmem>>, vector<32x64xbf16>
    %c32 = arith.constant 32 : index
    %c0_1 = arith.constant 0 : index
    %1 = vector.load %arg1[%c32, %c0_1] : memref<224x64xbf16, #tpu.memory_space<vmem>>, vector<64x64xbf16>
    %c96 = arith.constant 96 : index
    %c0_2 = arith.constant 0 : index
    %2 = vector.load %arg1[%c96, %c0_2] : memref<224x64xbf16, #tpu.memory_space<vmem>>, vector<64x64xbf16>
    %c160 = arith.constant 160 : index
    %c0_3 = arith.constant 0 : index
    %3 = vector.load %arg1[%c160, %c0_3] : memref<224x64xbf16, #tpu.memory_space<vmem>>, vector<64x64xbf16>
    %c0_4 = arith.constant 0 : index
    %c0_5 = arith.constant 0 : index
    %4 = vector.load %arg2[%c0_4, %c0_5] : memref<2x64xf32, #tpu.memory_space<vmem>>, vector<1x64xf32>
    %c1 = arith.constant 1 : index
    %c0_6 = arith.constant 0 : index
    %5 = vector.load %arg2[%c1, %c0_6] : memref<2x64xf32, #tpu.memory_space<vmem>>, vector<1x64xf32>
    %6 = vector.shape_cast %5 : vector<1x64xf32> to vector<1x64xf32>
    %7 = vector.broadcast %6 : vector<1x64xf32> to vector<8x64xf32>
    %c0_7 = arith.constant 0 : index
    %c0_8 = arith.constant 0 : index
    %8 = vector.load %arg3[%c0_7, %c0_8] : memref<65x128xf32, #tpu.memory_space<vmem>>, vector<64x128xf32>
    %c64 = arith.constant 64 : index
    %c0_9 = arith.constant 0 : index
    %9 = vector.load %arg3[%c64, %c0_9] : memref<65x128xf32, #tpu.memory_space<vmem>>, vector<1x128xf32>
    %c0_10 = arith.constant 0 : index
    %c0_11 = arith.constant 0 : index
    %10 = vector.load %arg0[%c0_10, %c0_11] : memref<48x32xbf16, #tpu.memory_space<vmem>>, vector<48x32xbf16>
    %cst = arith.constant dense<0.000000e+00> : vector<48x64xf32>
    %11 = tpu.matmul %10, %0, %cst {dimension_numbers = #tpu.dot_dimension_numbers<[1], [0], [0], [1], [0, 0, 1, 1], [], []>} : vector<48x32xbf16>, vector<32x64xbf16>, vector<48x64xf32> -> vector<48x64xf32>
    %12 = vector.broadcast %4 : vector<1x64xf32> to vector<48x64xf32>
    %13 = arith.addf %11, %12 : vector<48x64xf32>
    %14 = vector.extract_strided_slice %13 {offsets = [0, 0], sizes = [8, 64], strides = [1, 1]} : vector<48x64xf32> to vector<8x64xf32>
    %15 = math.tanh %14 : vector<8x64xf32>
    %16 = arith.truncf %15 : vector<8x64xf32> to vector<8x64xbf16>
    %cst_12 = arith.constant dense<0.000000e+00> : vector<8x64xf32>
    %17 = tpu.matmul %16, %2, %cst_12 {dimension_numbers = #tpu.dot_dimension_numbers<[1], [0], [0], [1], [0, 0, 1, 1], [], []>} : vector<8x64xbf16>, vector<64x64xbf16>, vector<8x64xf32> -> vector<8x64xf32>
    %18 = arith.addf %17, %7 : vector<8x64xf32>
    %19 = math.tanh %18 : vector<8x64xf32>
    %20 = vector.extract_strided_slice %13 {offsets = [8, 0], sizes = [8, 64], strides = [1, 1]} : vector<48x64xf32> to vector<8x64xf32>
    %21 = arith.truncf %15 : vector<8x64xf32> to vector<8x64xbf16>
    %cst_13 = arith.constant dense<0.000000e+00> : vector<8x64xf32>
    %22 = tpu.matmul %21, %1, %cst_13 {dimension_numbers = #tpu.dot_dimension_numbers<[1], [0], [0], [1], [0, 0, 1, 1], [], []>} : vector<8x64xbf16>, vector<64x64xbf16>, vector<8x64xf32> -> vector<8x64xf32>
    %23 = arith.addf %20, %22 : vector<8x64xf32>
    %24 = math.tanh %23 : vector<8x64xf32>
    %25 = arith.truncf %19 : vector<8x64xf32> to vector<8x64xbf16>
    %cst_14 = arith.constant dense<0.000000e+00> : vector<8x64xf32>
    %26 = tpu.matmul %25, %3, %cst_14 {dimension_numbers = #tpu.dot_dimension_numbers<[1], [0], [0], [1], [0, 0, 1, 1], [], []>} : vector<8x64xbf16>, vector<64x64xbf16>, vector<8x64xf32> -> vector<8x64xf32>
    %27 = arith.truncf %24 : vector<8x64xf32> to vector<8x64xbf16>
    %cst_15 = arith.constant dense<0.000000e+00> : vector<8x64xf32>
    %28 = tpu.matmul %27, %2, %cst_15 {dimension_numbers = #tpu.dot_dimension_numbers<[1], [0], [0], [1], [0, 0, 1, 1], [], []>} : vector<8x64xbf16>, vector<64x64xbf16>, vector<8x64xf32> -> vector<8x64xf32>
    %29 = arith.addf %26, %28 : vector<8x64xf32>
    %30 = arith.addf %29, %7 : vector<8x64xf32>
    %31 = math.tanh %30 : vector<8x64xf32>
    %32 = vector.extract_strided_slice %13 {offsets = [16, 0], sizes = [8, 64], strides = [1, 1]} : vector<48x64xf32> to vector<8x64xf32>
    %33 = arith.truncf %24 : vector<8x64xf32> to vector<8x64xbf16>
    %cst_16 = arith.constant dense<0.000000e+00> : vector<8x64xf32>
    %34 = tpu.matmul %33, %1, %cst_16 {dimension_numbers = #tpu.dot_dimension_numbers<[1], [0], [0], [1], [0, 0, 1, 1], [], []>} : vector<8x64xbf16>, vector<64x64xbf16>, vector<8x64xf32> -> vector<8x64xf32>
    %35 = arith.addf %32, %34 : vector<8x64xf32>
    %36 = math.tanh %35 : vector<8x64xf32>
    %37 = arith.truncf %31 : vector<8x64xf32> to vector<8x64xbf16>
    %cst_17 = arith.constant dense<0.000000e+00> : vector<8x64xf32>
    %38 = tpu.matmul %37, %3, %cst_17 {dimension_numbers = #tpu.dot_dimension_numbers<[1], [0], [0], [1], [0, 0, 1, 1], [], []>} : vector<8x64xbf16>, vector<64x64xbf16>, vector<8x64xf32> -> vector<8x64xf32>
    %39 = arith.truncf %36 : vector<8x64xf32> to vector<8x64xbf16>
    %cst_18 = arith.constant dense<0.000000e+00> : vector<8x64xf32>
    %40 = tpu.matmul %39, %2, %cst_18 {dimension_numbers = #tpu.dot_dimension_numbers<[1], [0], [0], [1], [0, 0, 1, 1], [], []>} : vector<8x64xbf16>, vector<64x64xbf16>, vector<8x64xf32> -> vector<8x64xf32>
    %41 = arith.addf %38, %40 : vector<8x64xf32>
    %42 = arith.addf %41, %7 : vector<8x64xf32>
    %43 = math.tanh %42 : vector<8x64xf32>
    %44 = vector.extract_strided_slice %13 {offsets = [24, 0], sizes = [8, 64], strides = [1, 1]} : vector<48x64xf32> to vector<8x64xf32>
    %45 = arith.truncf %36 : vector<8x64xf32> to vector<8x64xbf16>
    %cst_19 = arith.constant dense<0.000000e+00> : vector<8x64xf32>
    %46 = tpu.matmul %45, %1, %cst_19 {dimension_numbers = #tpu.dot_dimension_numbers<[1], [0], [0], [1], [0, 0, 1, 1], [], []>} : vector<8x64xbf16>, vector<64x64xbf16>, vector<8x64xf32> -> vector<8x64xf32>
    %47 = arith.addf %44, %46 : vector<8x64xf32>
    %48 = math.tanh %47 : vector<8x64xf32>
    %49 = arith.truncf %43 : vector<8x64xf32> to vector<8x64xbf16>
    %cst_20 = arith.constant dense<0.000000e+00> : vector<8x64xf32>
    %50 = tpu.matmul %49, %3, %cst_20 {dimension_numbers = #tpu.dot_dimension_numbers<[1], [0], [0], [1], [0, 0, 1, 1], [], []>} : vector<8x64xbf16>, vector<64x64xbf16>, vector<8x64xf32> -> vector<8x64xf32>
    %51 = arith.truncf %48 : vector<8x64xf32> to vector<8x64xbf16>
    %cst_21 = arith.constant dense<0.000000e+00> : vector<8x64xf32>
    %52 = tpu.matmul %51, %2, %cst_21 {dimension_numbers = #tpu.dot_dimension_numbers<[1], [0], [0], [1], [0, 0, 1, 1], [], []>} : vector<8x64xbf16>, vector<64x64xbf16>, vector<8x64xf32> -> vector<8x64xf32>
    %53 = arith.addf %50, %52 : vector<8x64xf32>
    %54 = arith.addf %53, %7 : vector<8x64xf32>
    %55 = math.tanh %54 : vector<8x64xf32>
    %56 = vector.extract_strided_slice %13 {offsets = [32, 0], sizes = [8, 64], strides = [1, 1]} : vector<48x64xf32> to vector<8x64xf32>
    %57 = arith.truncf %48 : vector<8x64xf32> to vector<8x64xbf16>
    %cst_22 = arith.constant dense<0.000000e+00> : vector<8x64xf32>
    %58 = tpu.matmul %57, %1, %cst_22 {dimension_numbers = #tpu.dot_dimension_numbers<[1], [0], [0], [1], [0, 0, 1, 1], [], []>} : vector<8x64xbf16>, vector<64x64xbf16>, vector<8x64xf32> -> vector<8x64xf32>
    %59 = arith.addf %56, %58 : vector<8x64xf32>
    %60 = math.tanh %59 : vector<8x64xf32>
    %61 = arith.truncf %55 : vector<8x64xf32> to vector<8x64xbf16>
    %cst_23 = arith.constant dense<0.000000e+00> : vector<8x64xf32>
    %62 = tpu.matmul %61, %3, %cst_23 {dimension_numbers = #tpu.dot_dimension_numbers<[1], [0], [0], [1], [0, 0, 1, 1], [], []>} : vector<8x64xbf16>, vector<64x64xbf16>, vector<8x64xf32> -> vector<8x64xf32>
    %63 = arith.truncf %60 : vector<8x64xf32> to vector<8x64xbf16>
    %cst_24 = arith.constant dense<0.000000e+00> : vector<8x64xf32>
    %64 = tpu.matmul %63, %2, %cst_24 {dimension_numbers = #tpu.dot_dimension_numbers<[1], [0], [0], [1], [0, 0, 1, 1], [], []>} : vector<8x64xbf16>, vector<64x64xbf16>, vector<8x64xf32> -> vector<8x64xf32>
    %65 = arith.addf %62, %64 : vector<8x64xf32>
    %66 = arith.addf %65, %7 : vector<8x64xf32>
    %67 = math.tanh %66 : vector<8x64xf32>
    %68 = vector.extract_strided_slice %13 {offsets = [40, 0], sizes = [8, 64], strides = [1, 1]} : vector<48x64xf32> to vector<8x64xf32>
    %69 = arith.truncf %60 : vector<8x64xf32> to vector<8x64xbf16>
    %cst_25 = arith.constant dense<0.000000e+00> : vector<8x64xf32>
    %70 = tpu.matmul %69, %1, %cst_25 {dimension_numbers = #tpu.dot_dimension_numbers<[1], [0], [0], [1], [0, 0, 1, 1], [], []>} : vector<8x64xbf16>, vector<64x64xbf16>, vector<8x64xf32> -> vector<8x64xf32>
    %71 = arith.addf %68, %70 : vector<8x64xf32>
    %72 = math.tanh %71 : vector<8x64xf32>
    %73 = arith.truncf %67 : vector<8x64xf32> to vector<8x64xbf16>
    %cst_26 = arith.constant dense<0.000000e+00> : vector<8x64xf32>
    %74 = tpu.matmul %73, %3, %cst_26 {dimension_numbers = #tpu.dot_dimension_numbers<[1], [0], [0], [1], [0, 0, 1, 1], [], []>} : vector<8x64xbf16>, vector<64x64xbf16>, vector<8x64xf32> -> vector<8x64xf32>
    %75 = arith.truncf %72 : vector<8x64xf32> to vector<8x64xbf16>
    %cst_27 = arith.constant dense<0.000000e+00> : vector<8x64xf32>
    %76 = tpu.matmul %75, %2, %cst_27 {dimension_numbers = #tpu.dot_dimension_numbers<[1], [0], [0], [1], [0, 0, 1, 1], [], []>} : vector<8x64xbf16>, vector<64x64xbf16>, vector<8x64xf32> -> vector<8x64xf32>
    %77 = arith.addf %74, %76 : vector<8x64xf32>
    %78 = arith.addf %77, %7 : vector<8x64xf32>
    %79 = math.tanh %78 : vector<8x64xf32>
    %cst_28 = arith.constant dense<0.000000e+00> : vector<8x128xf32>
    %80 = tpu.matmul %79, %8, %cst_28 {dimension_numbers = #tpu.dot_dimension_numbers<[1], [0], [0], [1], [0, 0, 1, 1], [], []>} : vector<8x64xf32>, vector<64x128xf32>, vector<8x128xf32> -> vector<8x128xf32>
    %81 = vector.broadcast %9 : vector<1x128xf32> to vector<8x128xf32>
    %82 = arith.addf %80, %81 : vector<8x128xf32>
    %c0_29 = arith.constant 0 : index
    %c0_30 = arith.constant 0 : index
    %83 = vector.load %arg4[%c0_29, %c0_30] : memref<8x128xf32, #tpu.memory_space<vmem>>, vector<8x128xf32>
    tpu.vector_store %arg4[%c0_29, %c0_30], %82 {strides = array<i32>} : memref<8x128xf32, #tpu.memory_space<vmem>>, vector<8x128xf32>,
    return
  }
}

</mosaic_0001>

<bundles_post_ra>
// kernel: tpu_custom_call.1
= control target key start
LH: loop header
LB: loop body
LE: loop exit
PB: predicated region body
PF: predicated region fallthrough
CT: control target
= control target key end

     0   :  { %s911_s0 = inlined_call_operand.vmem [shape: bf16[48,32], index: 0, kind: input, shape index: {}]   ;;  %s912_s1 = inlined_call_operand.vmem [shape: bf16[224,64], index: 1, kind: input, shape index: {}]   ;;  %s913_s2 = inlined_call_operand.vmem [shape: f32[2,64], index: 2, kind: input, shape index: {}]   ;;  %s914_s3 = inlined_call_operand.vmem [shape: f32[65,128], index: 3, kind: input, shape index: {}]   ;;  %s915_s4 = inlined_call_operand.hbm [shape: f32[8,128], index: 4, kind: output, shape index: {}]  }
   0x1   :  { %v604_v0 = vld [vmem:[%s912_s1 + $0x8] sm:$0xff]  ;;  %v603_v3 = vld [vmem:[%s912_s1] sm:$0xff] }
   0x2   :  { %v706_v1 = vld [vmem:[%s912_s1 + $0x48] sm:$0xff]  ;;  %109 = vmatpush.bf16.msra.mxu0 %v604_v0 }
   0x3   :  { %v711_v2 = vld [vmem:[%s912_s1 + $0x28] sm:$0xff]  ;;  %161 = vmatpush.bf16.msra.mxu1 %v706_v1 }
   0x4   :  { %199 = vmatpush.bf16.msra.mxu2 %v711_v2 }
   0x5   :  { %9 = vsyncpa [#allocation3], 0  ;;  %219 = vmatpush.bf16.msra.mxu3 %v706_v1  ;;  %v617_v4 = vld [vmem:[%s911_s0] sm:$0xff]  ;;  %vm93_vm0 = vcmask 261120   ;;  %v739_v7 = vld [vmem:[%s912_s1 + $0x38] sm:$0xff]  ;;  %vm153_vm1 = vcmask 523264  }
   0x6   :  { %110 = vmatpush.bf16.msra.mxu0 %v603_v3  ;;  %v726_v5 = vld [vmem:[%s912_s1 + $0x40] sm:$0xff]  ;;  %v744_v8 = vld [vmem:[%s912_s1 + $0x18] sm:$0xff]  ;;  %v752_v9 = vld [vmem:[%s912_s1 + $0x30] sm:$0xff]  ;;  %s674_s16 = smov [#allocation2]   ;;  %s506_s20 = sshll.u32 %s915_s4, 4  ;;  %s507_s20 = int_to_ptr.hbm [resolvable:$true] %s506_s20 }
   0x7   :  { %v731_v6 = vld [vmem:[%s912_s1 + $0x20] sm:$0xff]  ;;  %162 = vmatpush.bf16.msra.mxu1 %v726_v5  ;;  %v757_v10 = vld [vmem:[%s912_s1 + $0x10] sm:$0xff]  ;;  %v767_v11 = vld [vmem:[%s912_s1 + $0x68] sm:$0xff]  ;;  %s504_s17 = sshll.u32 %s674_s16, 4  ;;  %s505_s17 = int_to_ptr.vmem [resolvable:$true] %s504_s17 }
   0x8   :  { %200 = vmatpush.bf16.msra.mxu2 %v731_v6  ;;  %v780_v12 = vld [vmem:[%s913_s2] ss:$0 sm:$0xff]  ;;  %v799_v18 = vld [vmem:[%s912_s1 + $0x58] sm:$0xff]  ;;  %v806_v19 = vld [vmem:[%s912_s1 + $0x50] sm:$0xff] }
   0x9   :  { %535 = vmatmul.msk.bf16.vlgmr.msra.gmra.mxu0 %vm93_vm0, %v617_v4  ;;  %220 = vmatpush.bf16.msra.mxu3 %v726_v5  ;;  %v792_v17 = vld [vmem:[%s912_s1 + $0x60] sm:$0xff]  ;;  %v618_v20 = vld [vmem:[%s911_s0 + $0x8] sm:$0xff]  ;;  %v619_v34 = vld [vmem:[%s911_s0 + $0x10] sm:$0xff] }
   0xa   :  { %361 = vmatpush.bf16.msrb.mxu0 %v767_v11  ;;  %v825_v21 = vld [vmem:[%s913_s2 + $0x1] ss:$0 sm:$0xff] }
   0xb   :  { %163 = vmatpush.bf16.msra.mxu1 %v739_v7 }
   0xc   :  { %201 = vmatpush.bf16.msra.mxu2 %v744_v8 }
   0xd   :  { %221 = vmatpush.bf16.msra.mxu3 %v739_v7 }
   0xe   :  { %362 = vmatpush.bf16.msrb.mxu0 %v792_v17 }
   0xf   :  { %164 = vmatpush.bf16.msra.mxu1 %v752_v9 }
  0x10   :  { %202 = vmatpush.bf16.msra.mxu2 %v757_v10 }
  0x11   :  { %222 = vmatpush.bf16.msra.mxu3 %v752_v9 }
  0x12   :  { %363 = vmatpush.bf16.msrb.mxu0 %v799_v18 }
  0x13   :  { %259 = vmatpush.bf16.msrb.mxu1 %v767_v11 }
  0x14   :  { %274 = vmatpush.bf16.msrb.mxu2 %v711_v2 }
  0x15   :  { %294 = vmatpush.bf16.msrb.mxu3 %v706_v1 }
  0x16   :  { %364 = vmatpush.bf16.msrb.mxu0 %v806_v19 }
  0x17   :  { %260 = vmatpush.bf16.msrb.mxu1 %v792_v17 }
  0x18   :  { %275 = vmatpush.bf16.msrb.mxu2 %v731_v6 }
  0x19   :  { %295 = vmatpush.bf16.msrb.mxu3 %v726_v5  ;;  %536 = vmatmul.msk.bf16.gmra.mxu0 %vm93_vm0, %v618_v20 }
  0x1a   :  { %427 = vmatpush.bf16.msra.mxu0 %v711_v2 }
  0x1b   :  { %261 = vmatpush.bf16.msrb.mxu1 %v799_v18 }
  0x1c   :  { %276 = vmatpush.bf16.msrb.mxu2 %v744_v8 }
  0x1d   :  { %296 = vmatpush.bf16.msrb.mxu3 %v739_v7 }
  0x1e   :  { %428 = vmatpush.bf16.msra.mxu0 %v731_v6 }
  0x1f   :  { %262 = vmatpush.bf16.msrb.mxu1 %v806_v19 }
  0x20   :  { %277 = vmatpush.bf16.msrb.mxu2 %v757_v10 }
  0x21   :  { %297 = vmatpush.bf16.msrb.mxu3 %v752_v9 }
  0x22   :  { %429 = vmatpush.bf16.msra.mxu0 %v744_v8 }
  0x26   :  { %430 = vmatpush.bf16.msra.mxu0 %v757_v10 }
  0x29   :  { %537 = vmatmul.msk.bf16.gmra.mxu0 %vm93_vm0, %v619_v34  ;;  %v55_v34 = vld [vmem:[%s914_s3 + $0x28] sm:$0xff] }
  0x86   :  { %v112_v13 = vpop.f32.mrf.mxu0 }
  0x87   :  { %v113_v14 = vadd.f32 %v780_v12, %v112_v13 }
  0x89   :  { %624 = vtanh.f32 %v113_v14 }
  0x8e   :  { %v114_v24 = vpop.f32.mrf.mxu0 }
  0x8f   :  { %v625_v15 = vpop.eup %624  ;;  %v115_v25 = vadd.f32 %v780_v12, %v114_v24 }
  0x90   :  { %v128_v16 = vpack.c.bf16 %v625_v15, %v625_v15 }
  0x92   :  { %554 = vmatmul.msk.bf16.vlgmr.msra.gmra.mxu1 %vm153_vm1, %v128_v16  ;;  %571 = vmatmul.msk.bf16.vlgmr.msra.gmra.mxu2 %vm153_vm1, %v128_v16 }
  0x93   :  { %325 = vmatpush.bf16.msra.mxu2 %v711_v2  ;;  %310 = vmatpush.bf16.msra.mxu1 %v767_v11 }
  0x96   :  { %v117_v36 = vpop.f32.mrf.mxu0 }
  0x97   :  { %326 = vmatpush.bf16.msra.mxu2 %v731_v6  ;;  %311 = vmatpush.bf16.msra.mxu1 %v792_v17  ;;  %v118_v38 = vadd.f32 %v780_v12, %v117_v36  ;;  %v53_v36 = vld [vmem:[%s914_s3 + $0x18] sm:$0xff] }
  0x9b   :  { %327 = vmatpush.bf16.msra.mxu2 %v744_v8  ;;  %312 = vmatpush.bf16.msra.mxu1 %v799_v18 }
  0x9e   :  { %v119_v50 = vpop.f32.mrf.mxu0 }
  0x9f   :  { %328 = vmatpush.bf16.msra.mxu2 %v757_v10  ;;  %313 = vmatpush.bf16.msra.mxu1 %v806_v19  ;;  %v120_v52 = vadd.f32 %v780_v12, %v119_v50 }
 0x10f   :  { %v166_v22 = vpop.f32.mrf.mxu1 }
 0x110   :  { %v167_v23 = vadd.f32 %v825_v21, %v166_v22 }
 0x112   :  { %626 = vtanh.f32 %v167_v23 }
 0x115   :  { %v204_v26 = vpop.f32.mrf.mxu2 }
 0x116   :  { %v208_v27 = vadd.f32 %v204_v26, %v115_v25 }
 0x117   :  { %v168_v28 = vpop.f32.mrf.mxu1 }
 0x118   :  { %v627_v29 = vpop.eup %626  ;;  %628 = vtanh.f32 %v208_v27 }
 0x119   :  { %v210_v30 = vpack.c.bf16 %v627_v29, %v627_v29 }
 0x11b   :  { %589 = vmatmul.msk.bf16.vlgmr.msrb.gmra.mxu1 %vm153_vm1, %v210_v30 }
 0x11c   :  { %376 = vmatpush.bf16.msrb.mxu1 %v711_v2 }
 0x11d   :  { %v206_v31 = vpop.f32.mrf.mxu2 }
 0x11e   :  { %v629_v32 = vpop.eup %628 }
 0x11f   :  { %v211_v33 = vpack.c.bf16 %v629_v32, %v629_v32 }
 0x120   :  { %377 = vmatpush.bf16.msrb.mxu1 %v731_v6 }
 0x121   :  { %572 = vmatmul.msk.bf16.vlgmr.msra.gmra.mxu3 %vm153_vm1, %v211_v33  ;;  %590 = vmatmul.msk.bf16.vlgmr.msrb.gmra.mxu2 %vm153_vm1, %v211_v33  ;;  %v56_v33 = vld [vmem:[%s914_s3 + $0x30] sm:$0xff] }
 0x122   :  { %345 = vmatpush.bf16.msra.mxu3 %v706_v1  ;;  %396 = vmatpush.bf16.msrb.mxu2 %v706_v1 }
 0x124   :  { %378 = vmatpush.bf16.msrb.mxu1 %v744_v8 }
 0x126   :  { %346 = vmatpush.bf16.msra.mxu3 %v726_v5  ;;  %397 = vmatpush.bf16.msrb.mxu2 %v726_v5 }
 0x128   :  { %379 = vmatpush.bf16.msrb.mxu1 %v757_v10 }
 0x12a   :  { %347 = vmatpush.bf16.msra.mxu3 %v739_v7  ;;  %398 = vmatpush.bf16.msrb.mxu2 %v739_v7 }
 0x12e   :  { %348 = vmatpush.bf16.msra.mxu3 %v752_v9  ;;  %399 = vmatpush.bf16.msrb.mxu2 %v752_v9 }
 0x198   :  { %v264_v35 = vpop.f32.mrf.mxu1 }
 0x1a0   :  { %v266_v37 = vpop.f32.mrf.mxu1 }
 0x1a1   :  { %v52_v37 = vld [vmem:[%s914_s3 + $0x10] sm:$0xff] }
 0x1a4   :  { %v224_v39 = vpop.f32.mrf.mxu3  ;;  %v279_v40 = vpop.f32.mrf.mxu2 }
 0x1a5   :  { %v265_v41 = vadd.f32 %v264_v35, %v224_v39  ;;  %v283_v42 = vadd.f32 %v279_v40, %v118_v38  ;;  %v54_v35 = vld [vmem:[%s914_s3 + $0x20] sm:$0xff]  ;;  %v51_v38 = vld [vmem:[%s914_s3 + $0x8] sm:$0xff] }
 0x1a6   :  { %v50_v39 = vld [vmem:[%s914_s3] sm:$0xff] }
 0x1a7   :  { %v268_v43 = vadd.f32 %v825_v21, %v265_v41  ;;  %630 = vtanh.f32 %v283_v42 }
 0x1a9   :  { %632 = vtanh.f32 %v268_v43 }
 0x1ac   :  { %v226_v44 = vpop.f32.mrf.mxu3  ;;  %v281_v45 = vpop.f32.mrf.mxu2 }
 0x1ad   :  { %v631_v46 = vpop.eup %630 }
 0x1ae   :  { %v286_v47 = vpack.c.bf16 %v631_v46, %v631_v46 }
 0x1af   :  { %v633_v48 = vpop.eup %632 }
 0x1b0   :  { %v285_v49 = vpack.c.bf16 %v633_v48, %v633_v48  ;;  %591 = vmatmul.msk.bf16.vlgmr.msrb.gmra.mxu3 %vm153_vm1, %v286_v47  ;;  %593 = vmatmul.msk.bf16.vlgmr.msra.gmra.mxu2 %vm153_vm1, %v286_v47  ;;  %v623_v47 = vld [vmem:[%s914_s3 + $0x40] ss:$0 sm:$0xff] }
 0x1b1   :  { %412 = vmatpush.bf16.msrb.mxu3 %v767_v11  ;;  %463 = vmatpush.bf16.msra.mxu2 %v767_v11 }
 0x1b2   :  { %592 = vmatmul.msk.bf16.vlgmr.msra.gmra.mxu1 %vm153_vm1, %v285_v49 }
 0x1b3   :  { %447 = vmatpush.bf16.msra.mxu1 %v706_v1  ;;  %v122_v1 = vpop.f32.mrf.mxu0 }
 0x1b4   :  { %v123_v3 = vadd.f32 %v780_v12, %v122_v1 }
 0x1b5   :  { %413 = vmatpush.bf16.msrb.mxu3 %v792_v17  ;;  %464 = vmatpush.bf16.msra.mxu2 %v792_v17 }
 0x1b7   :  { %448 = vmatpush.bf16.msra.mxu1 %v726_v5 }
 0x1b9   :  { %414 = vmatpush.bf16.msrb.mxu3 %v799_v18  ;;  %465 = vmatpush.bf16.msra.mxu2 %v799_v18 }
 0x1bb   :  { %449 = vmatpush.bf16.msra.mxu1 %v739_v7  ;;  %v124_v2 = vpop.f32.mrf.mxu0 }
 0x1bc   :  { %v125_v18 = vadd.f32 %v780_v12, %v124_v2  ;;  %v57_v12 = vld [vmem:[%s914_s3 + $0x38] sm:$0xff] }
 0x1bd   :  { %415 = vmatpush.bf16.msrb.mxu3 %v806_v19  ;;  %466 = vmatpush.bf16.msra.mxu2 %v806_v19 }
 0x1bf   :  { %450 = vmatpush.bf16.msra.mxu1 %v752_v9 }
 0x22f   :  { %v315_v51 = vpop.f32.mrf.mxu1 }
 0x233   :  { %v299_v53 = vpop.f32.mrf.mxu3  ;;  %v330_v54 = vpop.f32.mrf.mxu2 }
 0x234   :  { %v316_v55 = vadd.f32 %v315_v51, %v299_v53  ;;  %v334_v56 = vadd.f32 %v330_v54, %v120_v52 }
 0x236   :  { %v319_v57 = vadd.f32 %v825_v21, %v316_v55  ;;  %634 = vtanh.f32 %v334_v56 }
 0x237   :  { %v317_v58 = vpop.f32.mrf.mxu1 }
 0x238   :  { %636 = vtanh.f32 %v319_v57 }
 0x23b   :  { %v301_v59 = vpop.f32.mrf.mxu3  ;;  %v332_v60 = vpop.f32.mrf.mxu2 }
 0x23c   :  { %v635_v61 = vpop.eup %634 }
 0x23d   :  { %v337_v62 = vpack.c.bf16 %v635_v61, %v635_v61 }
 0x23e   :  { %v637_v63 = vpop.eup %636 }
 0x23f   :  { %v336_v0 = vpack.c.bf16 %v637_v63, %v637_v63  ;;  %594 = vmatmul.msk.bf16.vlgmr.msra.gmra.mxu3 %vm153_vm1, %v337_v62  ;;  %596 = vmatmul.msk.bf16.vlgmr.msrb.gmra.mxu1 %vm153_vm1, %v337_v62 }
 0x240   :  { %486 = vmatpush.msra.mxu3 %v57_v12 }
 0x241   :  { %595 = vmatmul.msk.bf16.vlgmr.msrb.gmra.mxu0 %vm153_vm1, %v336_v0 }
 0x242   :  { %487 = vmatpush.msra.mxu3 %v56_v33 }
 0x244   :  { %488 = vmatpush.msra.mxu3 %v55_v34 }
 0x246   :  { %489 = vmatpush.msra.mxu3 %v54_v35 }
 0x248   :  { %490 = vmatpush.msra.mxu3 %v53_v36 }
 0x24a   :  { %491 = vmatpush.msra.mxu3 %v52_v37 }
 0x24c   :  { %492 = vmatpush.msra.mxu3 %v51_v38 }
 0x24e   :  { %493 = vmatpush.msra.mxu3 %v50_v39 }
 0x2bc   :  { %v381_v4 = vpop.f32.mrf.mxu1 }
 0x2bd   :  { %v385_v5 = vadd.f32 %v381_v4, %v123_v3 }
 0x2be   :  { %v366_v6 = vpop.f32.mrf.mxu0 }
 0x2bf   :  { %638 = vtanh.f32 %v385_v5 }
 0x2c2   :  { %v350_v7 = vpop.f32.mrf.mxu3 }
 0x2c3   :  { %v367_v8 = vadd.f32 %v366_v6, %v350_v7 }
 0x2c4   :  { %v383_v9 = vpop.f32.mrf.mxu1 }
 0x2c5   :  { %v639_v10 = vpop.eup %638  ;;  %v370_v11 = vadd.f32 %v825_v21, %v367_v8 }
 0x2c6   :  { %v388_v13 = vpack.c.bf16 %v639_v10, %v639_v10  ;;  %v368_v14 = vpop.f32.mrf.mxu0 }
 0x2c7   :  { %640 = vtanh.f32 %v370_v11 }
 0x2c8   :  { %597 = vmatmul.msk.bf16.vlgmr.msrb.gmra.mxu2 %vm153_vm1, %v388_v13  ;;  %599 = vmatmul.msk.bf16.vlgmr.msra.gmra.mxu0 %vm153_vm1, %v388_v13 }
 0x2ca   :  { %v352_v15 = vpop.f32.mrf.mxu3 }
 0x2cd   :  { %v641_v16 = vpop.eup %640 }
 0x2ce   :  { %v387_v17 = vpack.c.bf16 %v641_v16, %v641_v16 }
 0x2d0   :  { %598 = vmatmul.msk.bf16.vlgmr.msrb.gmra.mxu3 %vm153_vm1, %v387_v17 }
 0x345   :  { %v432_v19 = vpop.f32.mrf.mxu0 }
 0x346   :  { %v436_v20 = vadd.f32 %v432_v19, %v125_v18 }
 0x348   :  { %642 = vtanh.f32 %v436_v20 }
 0x34b   :  { %v401_v22 = vpop.f32.mrf.mxu2 }
 0x34d   :  { %v434_v23 = vpop.f32.mrf.mxu0 }
 0x34e   :  { %v643_v24 = vpop.eup %642 }
 0x34f   :  { %v439_v25 = vpack.c.bf16 %v643_v24, %v643_v24 }
 0x351   :  { %600 = vmatmul.msk.bf16.vlgmr.msra.gmra.mxu1 %vm153_vm1, %v439_v25 }
 0x353   :  { %v403_v26 = vpop.f32.mrf.mxu2  ;;  %v417_v27 = vpop.f32.mrf.mxu3 }
 0x354   :  { %v418_v28 = vadd.f32 %v417_v27, %v401_v22 }
 0x356   :  { %v421_v29 = vadd.f32 %v825_v21, %v418_v28 }
 0x358   :  { %644 = vtanh.f32 %v421_v29 }
 0x35b   :  { %v419_v30 = vpop.f32.mrf.mxu3 }
 0x35e   :  { %v645_v31 = vpop.eup %644 }
 0x35f   :  { %v438_v32 = vpack.c.bf16 %v645_v31, %v645_v31 }
 0x361   :  { %601 = vmatmul.msk.bf16.vlgmr.msra.gmra.mxu2 %vm153_vm1, %v438_v32 }
 0x3ce   :  { %v452_v40 = vpop.f32.mrf.mxu1 }
 0x3d6   :  { %v454_v41 = vpop.f32.mrf.mxu1 }
 0x3e4   :  { %v468_v42 = vpop.f32.mrf.mxu2 }
 0x3e5   :  { %v469_v43 = vadd.f32 %v468_v42, %v452_v40 }
 0x3e7   :  { %v472_v44 = vadd.f32 %v825_v21, %v469_v43 }
 0x3e9   :  { %646 = vtanh.f32 %v472_v44 }
 0x3ec   :  { %v470_v45 = vpop.f32.mrf.mxu2 }
 0x3ef   :  { %v647_v46 = vpop.eup %646 }
 0x3f0   :  { %602 = vmatmul.msk.f32.vlgmr.msra.gmra.mxu3 %vm153_vm1, %v647_v46 }
 0x473   :  { %v495_v48 = vpop.f32.mrf.mxu3 }
 0x474   :  { %v496_v49 = vadd.f32 %v623_v47, %v495_v48 }
 0x476   :  { %498 = vst [vmem:[#allocation2] sm:$0xff] %v496_v49 }
 0x477   :  { %509 = dma.vmem_to_hbm [thread:$0]  %s505_s17, 128, %s507_s20, [#allocation3]  }
 0x478   :  { %672 = dma.done.wait [#allocation3], 128  }
 0x479   :  { %673 = vsyncadd [#allocation3], 4294967168 }
 0x47a   :  { %514 = vsyncpa [#allocation3], 1 }

</bundles_post_ra>
